<compile_context>
chip_gen: v7x
topology: tpu7x:2x2x1
jax: 0.10.0
libtpu: 0.0.40
codegen_flags: <defaults>
</compile_context>

<pallas_src>
import functools

import jax
import jax.numpy as jnp
from jax import lax
from jax.experimental import pallas as pl
from jax.experimental.pallas import tpu as pltpu

_LANES = 128


def _gaussian_nll_tile(mean, var_raw, target):
    """Elementwise hot path (always computed in f32, regardless of input dtype):
       0.5 * (log(clamp(var, 1e-6)) + (target - mean)^2 / clamp(var, 1e-6))."""
    mean = mean.astype(jnp.float32)
    target = target.astype(jnp.float32)
    var = jnp.maximum(var_raw.astype(jnp.float32), jnp.float32(1e-6))  # torch.clamp(min=1e-6)
    log_var = jnp.log(var)
    diff = target - mean
    # EUP approximate reciprocal + one Newton-Raphson refinement (2 VPU ops): keeps the
    # quotient off the VALU divide expansion while staying within ~1e-7 relative error.
    inv = pl.reciprocal(var, approx=True)
    inv = inv * (jnp.float32(2.0) - var * inv)
    return jnp.float32(0.5) * (log_var + diff * diff * inv)


def _nll_gaussian_single_kernel(mean_ref, var_ref, tgt_ref, out_ref, *, total_elems):
    # Tiny problems: whole slab in one block, no grid, no accumulator scratch; the mean
    # is written directly to a (1, 1) SMEM output.
    loss = _gaussian_nll_tile(mean_ref[...], var_ref[...], tgt_ref[...])
    out_ref[0, 0] = jnp.sum(loss) / jnp.float32(total_elems)


def _make_grid_kernel(*, row_tile, sub_rows, n_inner, n_blocks, rows_valid, needs_mask):
    """Streaming-reduction kernel over a (n_outer, n_inner) grid.

    Each step folds its (row_tile, 128) tile into an (8, 128) VMEM vector accumulator
    via sub-chunked VPU adds (working set stays a few vregs); the single cross-lane XLU
    reduce happens only in the final step of each outer chunk.
    """
    n_sub = row_tile // sub_rows

    def kernel(mean_ref, var_ref, tgt_ref, out_ref, acc_ref):
        o = pl.program_id(0)
        i = pl.program_id(1)

        @pl.when(i == 0)
        def _():
            acc_ref[...] = jnp.zeros_like(acc_ref)

        # Logical block index; >= n_blocks only for padded grid steps (fully masked out).
        b = o * n_inner + i
        row0 = b * row_tile

        def body(j, acc):
            r = pl.multiple_of(j * sub_rows, sub_rows)
            loss = _gaussian_nll_tile(mean_ref[pl.ds(r, sub_rows), :],
                                      var_ref[pl.ds(r, sub_rows), :],
                                      tgt_ref[pl.ds(r, sub_rows), :])
            if needs_mask:
                gr = row0 + r + lax.broadcasted_iota(jnp.int32, (sub_rows, _LANES), 0)
                loss = jnp.where(gr < rows_valid, loss, jnp.float32(0.0))
            # VPU fold of the sub-chunk into the vreg-carried (8, 128) accumulator.
            return acc + loss.reshape(-1, 8, _LANES).sum(axis=0)

        part = lax.fori_loop(0, n_sub, body, jnp.zeros((8, _LANES), jnp.float32),
                             unroll=True if n_sub <= 8 else 4)
        acc_ref[...] += part

        @pl.when(i == n_inner - 1)
        def _():
            out_ref[0, 0] = jnp.sum(acc_ref[...])  # one partial sum per outer chunk

    return kernel


def _default_outer_chunks():
    # Only v7x-class chips have 2 TensorCores; elsewhere a single outer chunk avoids a
    # spare accumulator re-init / extra XLU reduce / extra wrapper add (tiny, but free).
    try:
        kind = jax.devices()[0].device_kind.lower()
    except Exception:
        return 1
    return 2 if "v7" in kind else 1


def nll_loss_gaussian(mean_pred, var_pred, target, *, row_tile=2048, outer_chunks=None):
    assert mean_pred.shape == var_pred.shape == target.shape
    assert row_tile > 0 and row_tile % 16 == 0  # multiple of 16 keeps bf16 tiling happy

    total = int(mean_pred.size)
    if total == 0:
        return jnp.float32(jnp.nan)  # matches torch: mean of an empty tensor is NaN

    # Keep the native dtype in HBM (no wrapper upcast); the kernel casts tiles to f32.
    m = mean_pred.reshape(-1)
    v = var_pred.reshape(-1)
    t = target.reshape(-1)

    # Lane padding (only when the element count is not a multiple of 128): neutral
    # elements (mean = target = 0, var = 1) contribute exactly 0 loss; we divide by the
    # true element count below.
    # TODO(synk): mask the last lane group in-kernel to avoid this (rare) extra copy.
    pad = (-total) % _LANES
    if pad:
        m = jnp.pad(m, (0, pad))
        t = jnp.pad(t, (0, pad))
        v = jnp.pad(v, (0, pad), constant_values=1)
    rows = (total + pad) // _LANES
    m2 = m.reshape(rows, _LANES)
    v2 = v.reshape(rows, _LANES)
    t2 = t.reshape(rows, _LANES)

    # Genuinely small problems (<= one tile): gridless single-block path.
    if rows <= row_tile:
        out = pl.pallas_call(
            functools.partial(_nll_gaussian_single_kernel, total_elems=total),
            out_shape=jax.ShapeDtypeStruct((1, 1), jnp.float32),
            in_specs=[pl.BlockSpec((rows, _LANES), lambda: (0, 0))] * 3,
            out_specs=pl.BlockSpec(memory_space=pltpu.SMEM),
        )(m2, v2, t2)
        return out[0, 0]

    # Streaming grid path: 2-D grid (outer "parallel" chunks x inner "arbitrary"
    # accumulation axis).  cdiv grid + clamped index_map + in-kernel row mask handle any
    # row count while keeping pipelining and the v7x 2-TensorCore split.
    n_blocks = -(-rows // row_tile)
    if outer_chunks is None:
        outer_chunks = _default_outer_chunks()
    n_outer = max(1, min(int(outer_chunks), n_blocks))
    n_inner = -(-n_blocks // n_outer)
    needs_mask = (rows != n_blocks * row_tile) or (n_outer * n_inner != n_blocks)

    sub_rows = next(s for s in (64, 32, 16, 8) if row_tile % s == 0)

    if needs_mask:
        # Clamp so padded / partial grid steps still DMA in-bounds data (masked to 0).
        def idx_map(o, i):
            return (jnp.minimum(o * n_inner + i, n_blocks - 1), 0)
    else:
        def idx_map(o, i):
            return (o * n_inner + i, 0)

    # Note: pipeline_mode=pl.Buffered(3) on these specs is a further ~few-% option once
    # VMEM headroom is confirmed on v5e; double-buffering already fits comfortably.
    in_spec = pl.BlockSpec((row_tile, _LANES), idx_map)
    kernel = _make_grid_kernel(row_tile=row_tile, sub_rows=sub_rows, n_inner=n_inner,
                               n_blocks=n_blocks, rows_valid=rows, needs_mask=needs_mask)
    partials = pl.pallas_call(
        kernel,
        out_shape=jax.ShapeDtypeStruct((n_outer, 1), jnp.float32),
        grid_spec=pltpu.PrefetchScalarGridSpec(
            num_scalar_prefetch=0,
            grid=(n_outer, n_inner),
            in_specs=[in_spec, in_spec, in_spec],
            out_specs=pl.BlockSpec((1, 1), lambda o, i: (o, 0), memory_space=pltpu.SMEM),
            scratch_shapes=[pltpu.VMEM((8, _LANES), jnp.float32)],
        ),
        compiler_params=pltpu.CompilerParams(
            # outer chunks are independent (megacore split on v7x); inner axis accumulates
            dimension_semantics=("parallel", "arbitrary"),
        ),
    )(m2, v2, t2)
    return jnp.sum(partials) / jnp.float32(total)


def _reference(mean_pred, var_pred, target):
    var = jnp.maximum(var_pred, 1e-6)
    loss = 0.5 * (jnp.log(var) + (target - mean_pred) ** 2 / var)
    return jnp.mean(loss)


if __name__ == "__main__":
    key = jax.random.PRNGKey(0)
    k1, k2, k3 = jax.random.split(key, 3)

    # 1) Primary shape from the module: NCHW [2, 4, 16, 16] -> 16x128 slab, gridless path.
    shape = (2, 4, 16, 16)
    mean_pred = jax.random.normal(k1, shape, dtype=jnp.float32)
    var_pred = jnp.abs(jax.random.normal(k2, shape, dtype=jnp.float32)) * 0.5
    var_pred = var_pred.at[0, 0, 0, :4].set(jnp.array([0.0, 1e-8, 1e-7, 2.0], jnp.float32))
    target = jax.random.normal(k3, shape, dtype=jnp.float32)

    out = jax.block_until_ready(nll_loss_gaussian(mean_pred, var_pred, target))
    ref = _reference(mean_pred, var_pred, target)
    assert jnp.allclose(out, ref, rtol=1e-4, atol=1e-5), (out, ref)

    # 2) Small shape forced through the tiled grid path (even block split, no masking).
    shape2 = (4, 8, 32, 32)                     # 32768 elems -> 256 rows of 128 lanes
    k4, k5, k6 = jax.random.split(jax.random.PRNGKey(1), 3)
    m_b = jax.random.normal(k4, shape2, dtype=jnp.float32)
    v_b = jnp.abs(jax.random.normal(k5, shape2, dtype=jnp.float32)) * 0.5 + 1e-3
    t_b = jax.random.normal(k6, shape2, dtype=jnp.float32)
    out2 = jax.block_until_ready(
        nll_loss_gaussian(m_b, v_b, t_b, row_tile=64, outer_chunks=2))
    ref2 = _reference(m_b, v_b, t_b)
    assert jnp.allclose(out2, ref2, rtol=1e-4, atol=1e-5), (out2, ref2)

    # 3) bf16 inputs + non-dividing block count: exercises native-dtype streaming, the
    #    clamped index_map, the padded grid step, and the partial-tile row mask.
    shape3 = (5, 8, 32, 32)                     # 40960 elems -> 320 rows (3 blocks of 128)
    k7, k8, k9 = jax.random.split(jax.random.PRNGKey(2), 3)
    m_c = jax.random.normal(k7, shape3, dtype=jnp.float32).astype(jnp.bfloat16)
    v_c = (jnp.abs(jax.random.normal(k8, shape3, dtype=jnp.float32)) * 0.5
           + 1e-3).astype(jnp.bfloat16)
    t_c = jax.random.normal(k9, shape3, dtype=jnp.float32).astype(jnp.bfloat16)
    out3 = jax.block_until_ready(
        nll_loss_gaussian(m_c, v_c, t_c, row_tile=128, outer_chunks=2))
    ref3 = _reference(m_c.astype(jnp.float32), v_c.astype(jnp.float32),
                      t_c.astype(jnp.float32))
    assert jnp.allclose(out3, ref3, rtol=2e-4, atol=1e-5), (out3, ref3)

    print("KERNEL_OK")
</pallas_src>

<mosaic_0001>
module attributes {stable_mosaic.version = 11 : i64} {
  func.func @_nll_gaussian_single_kernel(%arg0: memref<16x128xf32, #tpu.memory_space<vmem>>, %arg1: memref<16x128xf32, #tpu.memory_space<vmem>>, %arg2: memref<16x128xf32, #tpu.memory_space<vmem>>, %arg3: memref<1x1xf32, #tpu.memory_space<smem>>) attributes {dimension_semantics = [], scalar_prefetch = 0 : i64, scratch_operands = 0 : i64, tpu.core_type = #tpu.core_type<tc>} {
    %c0 = arith.constant 0 : index
    %c0_0 = arith.constant 0 : index
    %0 = vector.load %arg0[%c0, %c0_0] : memref<16x128xf32, #tpu.memory_space<vmem>>, vector<16x128xf32>
    %c0_1 = arith.constant 0 : index
    %c0_2 = arith.constant 0 : index
    %1 = vector.load %arg1[%c0_1, %c0_2] : memref<16x128xf32, #tpu.memory_space<vmem>>, vector<16x128xf32>
    %c0_3 = arith.constant 0 : index
    %c0_4 = arith.constant 0 : index
    %2 = vector.load %arg2[%c0_3, %c0_4] : memref<16x128xf32, #tpu.memory_space<vmem>>, vector<16x128xf32>
    %cst = arith.constant 9.99999997E-7 : f32
    %3 = vector.broadcast %cst : f32 to vector<16x128xf32>
    %4 = arith.maximumf %1, %3 : vector<16x128xf32>
    %5 = math.log %4 : vector<16x128xf32>
    %6 = arith.subf %2, %0 : vector<16x128xf32>
    %7 = tpu.reciprocal %4 {approx = true} : vector<16x128xf32> -> vector<16x128xf32>
    %8 = arith.mulf %4, %7 : vector<16x128xf32>
    %cst_5 = arith.constant 2.000000e+00 : f32
    %9 = vector.broadcast %cst_5 : f32 to vector<16x128xf32>
    %10 = arith.subf %9, %8 : vector<16x128xf32>
    %11 = arith.mulf %7, %10 : vector<16x128xf32>
    %12 = arith.mulf %6, %6 : vector<16x128xf32>
    %13 = arith.mulf %12, %11 : vector<16x128xf32>
    %14 = arith.addf %5, %13 : vector<16x128xf32>
    %cst_6 = arith.constant 5.000000e-01 : f32
    %15 = vector.broadcast %cst_6 : f32 to vector<16x128xf32>
    %16 = arith.mulf %15, %14 : vector<16x128xf32>
    %17 = vector.shape_cast %16 : vector<16x128xf32> to vector<1x16x128xf32>
    %cst_7 = arith.constant dense<0.000000e+00> : vector<1xf32>
    %18 = vector.multi_reduction <add>, %17, %cst_7 [1, 2] : vector<1x16x128xf32> to vector<1xf32>
    %19 = vector.shape_cast %18 : vector<1xf32> to vector<1x1x1xf32>
    %20 = vector.extract %19[0, 0, 0] : f32 from vector<1x1x1xf32>
    %cst_8 = arith.constant 2.048000e+03 : f32
    %21 = arith.divf %20, %cst_8 : f32
    %c0_9 = arith.constant 0 : index
    %c0_10 = arith.constant 0 : index
    %22 = memref.load %arg3[%c0_9, %c0_10] : memref<1x1xf32, #tpu.memory_space<smem>>
    memref.store %21, %arg3[%c0_9, %c0_10] : memref<1x1xf32, #tpu.memory_space<smem>>
    return
  }
}

</mosaic_0001>

<bundles_post_ra>
// kernel: tpu_custom_call.1
= control target key start
LH: loop header
LB: loop body
LE: loop exit
PB: predicated region body
PF: predicated region fallthrough
CT: control target
= control target key end

     0   :  { %8 = vsyncpa [#allocation3], 0  ;;  %s304_s0 = inlined_call_operand.hbm [shape: f32[16,128], index: 0, kind: input, shape index: {}]   ;;  %s305_s1 = inlined_call_operand.hbm [shape: f32[16,128], index: 1, kind: input, shape index: {}]   ;;  %s306_s2 = inlined_call_operand.hbm [shape: f32[16,128], index: 2, kind: input, shape index: {}]   ;;  %s307_s3 = inlined_call_operand.hbm [shape: f32[1,1], index: 3, kind: output, shape index: {}]  }
   0x1   :  { %9 = vsyncpa [#allocation6], 0 }
   0x2   :  { %10 = vsyncpa [#allocation4], 0  ;;  %s214_s12 = smov [#allocation5]   ;;  %s215_s14 = smov [#allocation2]  }
   0x3   :  { %s28_s13 = sshll.u32 %s214_s12, 4  ;;  %s16_s15 = sshll.u32 %s215_s14, 4  ;;  %s29_s13 = int_to_ptr.vmem [resolvable:$true] %s28_s13  ;;  %s240_s15 = int_to_ptr.vmem [resolvable:$true] %s16_s15 }
   0x4   :  { %s132_s18 = scalar_lea.hbm %s305_s1, 256 }
   0x5   :  { %p133_p0 = scmp.ne.s32.totalorder %s305_s1, %s132_s18  ;;  %p136_p1 = scmp.lt.u32.totalorder %s132_s18, %s305_s1 }
   0x7   :  { %p138_p2 = pnand %p136_p1, %p133_p0 }
   0x9   :  { %141 = shalt.err (!%p138_p2)
}
   0xa   :  { %s142_s23 = scalar_lea.vmem %s29_s13, 256  ;;  %p147_p4 = scmp.lt.s32.totalorder %s29_s13, %s29_s13 }
   0xb   :  { %p143_p3 = scmp.ne.s32.totalorder %s29_s13, %s142_s23  ;;  %p148_p5 = scmp.lt.s32.totalorder %s142_s23, %s142_s23 }
   0xd   :  { %p149_p6 = por %p148_p5, %p147_p4 }
   0xf   :  { %p150_p7 = pnand %p149_p6, %p143_p3 }
  0x11   :  { %153 = shalt.err (!%p150_p7)
}
  0x12   :  { %s216_s24 = smov 128   ;;  %s217_s25 = smov 8  }
  0x13   :  { %34 = dma.hbm_to_vmem [thread:$0]  %s305_s1, 256, %s29_s13, [#allocation6], %s216_s24, %s216_s24, %s217_s25  }
  0x14   :  { %s154_s30 = scalar_lea.hbm %s304_s0, 256 }
  0x15   :  { %p155_p8 = scmp.ne.s32.totalorder %s304_s0, %s154_s30  ;;  %p158_p9 = scmp.lt.u32.totalorder %s154_s30, %s304_s0 }
  0x17   :  { %p160_p10 = pnand %p158_p9, %p155_p8 }
  0x19   :  { %163 = shalt.err (!%p160_p10)
}
  0x1a   :  { %s164_s8 = scalar_lea.vmem %s240_s15, 256  ;;  %p169_p12 = scmp.lt.s32.totalorder %s240_s15, %s240_s15 }
  0x1b   :  { %p165_p11 = scmp.ne.s32.totalorder %s240_s15, %s164_s8  ;;  %p170_p13 = scmp.lt.s32.totalorder %s164_s8, %s164_s8 }
  0x1d   :  { %p171_p0 = por %p170_p13, %p169_p12 }
  0x1f   :  { %p172_p1 = pnand %p171_p0, %p165_p11 }
  0x21   :  { %175 = shalt.err (!%p172_p1)
}
  0x22   :  { %22 = dma.hbm_to_vmem [thread:$0]  %s304_s0, 256, %s240_s15, [#allocation3], %s216_s24, %s216_s24, %s217_s25  }
  0x23   :  { %s218_s10 = smov [#allocation7]   ;;  %s176_s14 = scalar_lea.hbm %s306_s2, 256 }
  0x24   :  { %s40_s11 = sshll.u32 %s218_s10, 4  ;;  %p177_p2 = scmp.ne.s32.totalorder %s306_s2, %s176_s14  ;;  %s41_s11 = int_to_ptr.vmem [resolvable:$true] %s40_s11 }
  0x25   :  { %p180_p3 = scmp.lt.u32.totalorder %s176_s14, %s306_s2 }
  0x27   :  { %p182_p4 = pnand %p180_p3, %p177_p2 }
  0x29   :  { %185 = shalt.err (!%p182_p4)
}
  0x2a   :  { %s186_s20 = scalar_lea.vmem %s41_s11, 256  ;;  %p191_p6 = scmp.lt.s32.totalorder %s41_s11, %s41_s11 }
  0x2b   :  { %p187_p5 = scmp.ne.s32.totalorder %s41_s11, %s186_s20  ;;  %p192_p7 = scmp.lt.s32.totalorder %s186_s20, %s186_s20 }
  0x2d   :  { %p193_p8 = por %p192_p7, %p191_p6 }
  0x2f   :  { %p194_p9 = pnand %p193_p8, %p187_p5 }
  0x31   :  { %197 = shalt.err (!%p194_p9)
}
  0x32   :  { %46 = dma.hbm_to_vmem [thread:$0]  %s306_s2, 256, %s41_s11, [#allocation6], %s216_s24, %s216_s24, %s217_s25  }
  0x33   :  { %208 = dma.done.wait [#allocation3], 256  }
  0x34   :  { %209 = vsyncadd [#allocation3], 4294967040 }
  0x35   :  { %210 = dma.done.wait [#allocation6], 512  }
  0x36   :  { %211 = vsyncadd [#allocation6], 4294966784  ;;  %v58_v0 = vld [vmem:[#allocation5] sm:$0xff]  ;;  %v59_v1 = vld [vmem:[#allocation5 + $0x8] sm:$0xff]  ;;  %s198_s24 = scalar_lea.hbm %s307_s3, 16 }
  0x37   :  { %v62_v2 = vmax.f32 %v58_v0, 1e-06  ;;  %v63_v3 = vmax.f32 %v59_v1, 1e-06  ;;  %v56_v4 = vld [vmem:[#allocation2] sm:$0xff]  ;;  %v57_v6 = vld [vmem:[#allocation2 + $0x8] sm:$0xff]  ;;  %p199_p10 = scmp.ne.s32.totalorder %s307_s3, %s198_s24  ;;  %p202_p11 = scmp.lt.u32.totalorder %s198_s24, %s307_s3 }
  0x38   :  { %v60_v5 = vld [vmem:[#allocation7] sm:$0xff]  ;;  %v61_v7 = vld [vmem:[#allocation7 + $0x8] sm:$0xff] }
  0x39   :  { %124 = vrcp.f32 %v62_v2  ;;  %v68_v8 = vsub.f32 %v60_v5, %v56_v4  ;;  %v69_v10 = vsub.f32 %v61_v7, %v57_v6  ;;  %p204_p12 = pnand %p202_p11, %p199_p10 }
  0x3a   :  { %126 = vrcp.f32 %v63_v3 }
  0x3b   :  { %128 = vlog2.f32 %v62_v2  ;;  %v78_v17 = vmul.f32 %v68_v8, %v68_v8  ;;  %v79_v19 = vmul.f32 %v69_v10, %v69_v10 }
  0x3c   :  { %130 = vlog2.f32 %v63_v3 }
  0x43   :  { %v125_v9 = vpop.eup %124 }
  0x44   :  { %v127_v11 = vpop.eup %126  ;;  %v72_v12 = vmul.f32 %v125_v9, %v62_v2 }
  0x45   :  { %v129_v13 = vpop.eup %128  ;;  %v73_v14 = vmul.f32 %v127_v11, %v63_v3 }
  0x46   :  { %v131_v15 = vpop.eup %130  ;;  %v74_v16 = vsub.f32 2.0, %v72_v12  ;;  %v65_v20 = vmul.f32 0.6931472, %v129_v13 }
  0x47   :  { %v75_v18 = vsub.f32 2.0, %v73_v14  ;;  %v67_v22 = vmul.f32 0.6931472, %v131_v15 }
  0x48   :  { %v76_v21 = vmul.f32 %v125_v9, %v74_v16 }
  0x49   :  { %v77_v23 = vmul.f32 %v127_v11, %v75_v18 }
  0x4a   :  { %v80_v24 = vmul.f32 %v78_v17, %v76_v21 }
  0x4b   :  { %v81_v25 = vmul.f32 %v79_v19, %v77_v23 }
  0x4c   :  { %v82_v26 = vadd.f32 %v80_v24, %v65_v20 }
  0x4d   :  { %v83_v27 = vadd.f32 %v81_v25, %v67_v22 }
  0x4e   :  { %v84_v28 = vmul.f32 0.5, %v82_v26 }
  0x4f   :  { %v85_v29 = vmul.f32 0.5, %v83_v27 }
  0x51   :  { %v86_v30 = vadd.f32 %v85_v29, %v84_v28 }
  0x53   :  { %87 = vadd.xlane.f32.xlu0 %v86_v30 }
  0xe0   :  { %v88_v31 = vpop.xlane.xlu0 %87 }
  0xe1   :  { %v89_v32 = vrot.slane %v88_v31, 4 }
  0xe3   :  { %v90_v33 = vadd.f32 %v89_v32, %v88_v31 }
  0xe5   :  { %v91_v34 = vrot.slane %v90_v33, 2 }
  0xe7   :  { %v92_v35 = vadd.f32 %v91_v34, %v90_v33 }
  0xe9   :  { %v93_v36 = vrot.slane %v92_v35, 1 }
  0xeb   :  { %v94_v37 = vadd.f32 %v93_v36, %v92_v35 }
  0xed   :  { %116 = vpush %v94_v37 }
 0x11e   :  { %s117_s2 = spop %116 }
 0x11f   :  { %s98_s21 = smul.f32 0.00048828125, %s117_s2 }
 0x121   :  { %100 = sst [smem:[#allocation8]] %s98_s21 }
 0x122   :  { %207 = shalt.err (!%p204_p12)
}
 0x123   :  { %s219_s29 = smov [#allocation8]  }
 0x124   :  { %108 = dma.smem_to_hbm %s219_s29, 16, %s307_s3, [#allocation4]  }
 0x125   :  { %212 = dma.done.wait [#allocation4], 16  }
 0x126   :  { %213 = vsyncadd [#allocation4], 4294967280 }
 0x127   :  { %112 = sfence }
 0x128   :  { %113 = vsyncpa [#allocation3], 1 }
 0x129   :  { %114 = vsyncpa [#allocation6], 1 }
 0x12a   :  { %115 = vsyncpa [#allocation4], 1 }

</bundles_post_ra>
